<compile_context>
chip_gen: v6e
topology: v6e:2x2x1
jax: 0.10.0
libtpu: 0.0.40
codegen_flags: <defaults>
</compile_context>

<pallas_src>
import math
import functools

import jax
import jax.numpy as jnp
from jax.experimental import pallas as pl
from jax.experimental.pallas import tpu as pltpu


NEG_INF = -1e9


def mha_kernel(
    q_ref,                      # (TQ, E)  bf16 query tile
    k_ref,                      # (Sk, E)  bf16 keys for this batch
    v_ref,                      # (Sk, E)  bf16 values for this batch
    kpm_ref,                    # (1, Sk)  int8 key-padding mask (1 = ignore)
    am_ref,                     # (TQ, Sk) int8 mask (1 = disallow) OR f32 bias
    wq_ref, wk_ref, wv_ref,     # (E, E)   bf16 (wq pre-scaled by 1/sqrt(dh))
    bq_ref, bk_ref, bv_ref,     # (1, E)   f32  (bq pre-scaled)
    wo_ref, bo_ref,             # (E, E) bf16, (1, E) f32
    o_ref,                      # (TQ, E)  output tile
    k_cache,                    # (Sk, E)  bf16 VMEM scratch: projected K
    v_cache,                    # (Sk, E)  bf16 VMEM scratch: projected V
    attn_ref,                   # (TQ, E)  bf16 VMEM scratch: concat head outs
    *, heads: int,
):
    # ---- project K/V only once per batch. The q-tile grid axis is innermost
    #      and marked "arbitrary", so the cache written at t == 0 is valid for
    #      every later query tile of the same batch on the same core.
    @pl.when(pl.program_id(1) == 0)
    def _project_kv():
        k = jnp.dot(k_ref[...], wk_ref[...],
                    preferred_element_type=jnp.float32) + bk_ref[...]
        v = jnp.dot(v_ref[...], wv_ref[...],
                    preferred_element_type=jnp.float32) + bv_ref[...]
        k_cache[...] = k.astype(jnp.bfloat16)
        v_cache[...] = v.astype(jnp.bfloat16)

    # ---- Q projection for this tile (softmax scale folded into wq/bq).
    q = jnp.dot(q_ref[...], wq_ref[...],
                preferred_element_type=jnp.float32) + bq_ref[...]
    q_b = q.astype(jnp.bfloat16)
    E = q.shape[-1]
    dh = E // heads

    # ---- additive attention bias, hoisted out of the head loop (f32; v5e has
    #      no bf16 VPU, and stacked -1e9 biases must not saturate).
    kpm_bias = kpm_ref[...].astype(jnp.float32) * NEG_INF            # (1, Sk)
    if am_ref.dtype == jnp.int8:
        am_bias = am_ref[...].astype(jnp.float32) * NEG_INF          # (TQ, Sk)
    else:
        am_bias = am_ref[...].astype(jnp.float32)                    # float bias
    bias = am_bias + kpm_bias                                        # (TQ, Sk)
    # NOTE: a fully-masked row yields a uniform (not NaN) distribution because
    # the -1e9 biases cancel under max-subtraction; the demo never hits it
    # (causal always allows key 0).

    # ---- per-head attention; each head writes its slice of attn_ref.
    for h in range(heads):                                           # static
        lo, hi = h * dh, (h + 1) * dh
        k_h = k_cache[:, lo:hi]                                      # (Sk, dh)
        v_h = v_cache[:, lo:hi]                                      # (Sk, dh)
        scores = jnp.dot(q_b[:, lo:hi], k_h.T,
                         preferred_element_type=jnp.float32)         # (TQ, Sk)
        scores = scores + bias
        m = jnp.max(scores, axis=-1, keepdims=True)
        p = jnp.exp(scores - m)                                      # unnormalized
        denom = jnp.sum(p, axis=-1, keepdims=True)
        head_out = jnp.dot(p.astype(jnp.bfloat16), v_h,
                           preferred_element_type=jnp.float32)       # (TQ, dh)
        # deferred normalization: scale the narrow (TQ, dh) output instead of
        # the wide (TQ, Sk) probability matrix; reciprocal runs on the EUP.
        head_out = head_out * pl.reciprocal(denom, approx=True)
        attn_ref[:, lo:hi] = head_out.astype(jnp.bfloat16)
        # attention-weight dropout -> identity (inference)

    # ---- single full-width output projection (contraction K = E fills the MXU).
    out = jnp.dot(attn_ref[...], wo_ref[...],
                  preferred_element_type=jnp.float32) + bo_ref[...]
    o_ref[...] = out.astype(o_ref.dtype)


def mha_forward(query, key, value, key_padding_mask, look_ahead_mask,
                params, *, heads, tq=None):
    """query: (B, Sq, E); key/value: (B, Sk, E);
    key_padding_mask: (B, Sk) bool (True = ignore key) or None;
    look_ahead_mask: (Sq, Sk) bool (True = disallow) or float additive bias or None.
    """
    B, Sq, E = query.shape
    _, Sk, _ = key.shape
    assert value.shape == key.shape
    dh = E // heads
    assert dh * heads == E

    # ---- masks (PyTorch convention: True = masked out) -> int8 / f32 bias
    if key_padding_mask is None:
        kpm = jnp.zeros((B, 1, Sk), jnp.int8)
    else:
        kpm = key_padding_mask.astype(jnp.int8).reshape(B, 1, Sk)
    if look_ahead_mask is None:
        am = jnp.zeros((Sq, Sk), jnp.int8)
    elif look_ahead_mask.dtype == jnp.bool_:
        am = look_ahead_mask.astype(jnp.int8)
    else:
        am = look_ahead_mask.astype(jnp.float32)   # additive float attn_mask

    # ---- weights: fold 1/sqrt(dh) into the q projection; pre-cast to bf16
    scale = 1.0 / math.sqrt(dh)
    wq = (params["wq"] * scale).astype(jnp.bfloat16)
    wk = params["wk"].astype(jnp.bfloat16)
    wv = params["wv"].astype(jnp.bfloat16)
    wo = params["wo"].astype(jnp.bfloat16)
    bq = (params["bq"] * scale).reshape(1, E).astype(jnp.float32)
    bk = params["bk"].reshape(1, E).astype(jnp.float32)
    bv = params["bv"].reshape(1, E).astype(jnp.float32)
    bo = params["bo"].reshape(1, E).astype(jnp.float32)

    # ---- query tiling: pad Sq up to a multiple of the tile (no giant tile).
    if tq is None:
        # TODO(synk): raise to 256 on v6e/v7x when the VMEM budget allows.
        tq = Sq if Sq <= 128 else 128
    Sq_pad = pl.cdiv(Sq, tq) * tq
    n_qt = Sq_pad // tq

    # ---- activations stream as bf16 (halves HBM bytes for q/k/v).
    q_in = query.astype(jnp.bfloat16)
    k_in = key.astype(jnp.bfloat16)
    v_in = value.astype(jnp.bfloat16)
    if Sq_pad != Sq:
        q_in = jnp.pad(q_in, ((0, 0), (0, Sq_pad - Sq), (0, 0)))
        am = jnp.pad(am, ((0, Sq_pad - Sq), (0, 0)))

    const2d = lambda shape: pl.BlockSpec(shape, lambda b, t: (0, 0))

    in_specs = [
        pl.BlockSpec((None, tq, E), lambda b, t: (b, t, 0)),   # query tile
        pl.BlockSpec((None, Sk, E), lambda b, t: (b, 0, 0)),   # key   (per batch)
        pl.BlockSpec((None, Sk, E), lambda b, t: (b, 0, 0)),   # value (per batch)
        pl.BlockSpec((None, 1, Sk), lambda b, t: (b, 0, 0)),   # key-padding mask
        pl.BlockSpec((tq, Sk),      lambda b, t: (t, 0)),      # look-ahead mask
        const2d((E, E)), const2d((E, E)), const2d((E, E)),     # wq, wk, wv
        const2d((1, E)), const2d((1, E)), const2d((1, E)),     # bq, bk, bv
        const2d((E, E)), const2d((1, E)),                      # wo, bo
    ]

    scratch_shapes = [
        pltpu.VMEM((Sk, E), jnp.bfloat16),   # projected K cache
        pltpu.VMEM((Sk, E), jnp.bfloat16),   # projected V cache
        pltpu.VMEM((tq, E), jnp.bfloat16),   # concatenated head outputs
    ]

    flops = 2 * B * (2 * Sq_pad * E * E + 2 * Sk * E * E + 2 * Sq_pad * Sk * E)
    transcendentals = B * heads * Sq_pad * (Sk + 1)
    bytes_accessed = (2 * B * (Sq_pad * E + 2 * Sk * E)   # q, k, v (bf16 in)
                      + 4 * B * Sq_pad * E                # out (f32)
                      + B * Sk + Sq_pad * Sk              # masks (int8)
                      + 2 * 4 * E * E + 4 * 4 * E)        # weights + biases

    out = pl.pallas_call(
        functools.partial(mha_kernel, heads=heads),
        out_shape=jax.ShapeDtypeStruct((B, Sq_pad, E), query.dtype),
        grid=(B, n_qt),
        in_specs=in_specs,
        out_specs=pl.BlockSpec((None, tq, E), lambda b, t: (b, t, 0)),
        scratch_shapes=scratch_shapes,
        compiler_params=pltpu.CompilerParams(
            # batch axis parallel (2 TCs on v7x split batches); q-tile axis is
            # "arbitrary" because the K/V cache written at t == 0 is reused.
            dimension_semantics=("parallel", "arbitrary"),
            vmem_limit_bytes=48 * 1024 * 1024),
        cost_estimate=pl.CostEstimate(flops=flops,
                                      transcendentals=transcendentals,
                                      bytes_accessed=bytes_accessed),
    )(q_in, k_in, v_in, kpm, am, wq, wk, wv, bq, bk, bv, wo, bo)

    if Sq_pad != Sq:
        out = out[:, :Sq, :]
    return out


def mha_reference(query, key, value, key_padding_mask, look_ahead_mask,
                  params, *, heads):
    """Pure-JAX f32 reference matching nn.MultiheadAttention semantics."""
    B, Sq, E = query.shape
    dh = E // heads
    q = query @ params["wq"] + params["bq"]
    k = key @ params["wk"] + params["bk"]
    v = value @ params["wv"] + params["bv"]

    def split(x):
        return x.reshape(B, -1, heads, dh).transpose(0, 2, 1, 3)

    qh, kh, vh = split(q), split(k), split(v)
    scores = jnp.einsum("bhqd,bhkd->bhqk", qh, kh) / math.sqrt(dh)
    bias = jnp.zeros((B, 1, Sq, key.shape[1]), jnp.float32)
    if look_ahead_mask is not None:
        la = jnp.where(look_ahead_mask, NEG_INF, 0.0) \
            if look_ahead_mask.dtype == jnp.bool_ else look_ahead_mask
        bias = bias + la[None, None]
    if key_padding_mask is not None:
        bias = bias + jnp.where(key_padding_mask, NEG_INF, 0.0)[:, None, None, :]
    p = jax.nn.softmax(scores + bias, axis=-1)
    o = jnp.einsum("bhqk,bhkd->bhqd", p, vh)
    o = o.transpose(0, 2, 1, 3).reshape(B, Sq, E)
    return o @ params["wo"] + params["bo"]


def init_params(key, features):
    E = features
    ks = jax.random.split(key, 5)
    s = 0.05
    # PyTorch stores in_proj as (3E, E) acting via x @ W^T; we keep the
    # transposed (E, E) layout so the kernel always computes x @ W.
    return {
        "wq": s * jax.random.normal(ks[0], (E, E), jnp.float32),
        "wk": s * jax.random.normal(ks[1], (E, E), jnp.float32),
        "wv": s * jax.random.normal(ks[2], (E, E), jnp.float32),
        "wo": s * jax.random.normal(ks[3], (E, E), jnp.float32),
        "bq": jnp.zeros((E,), jnp.float32),
        "bk": jnp.zeros((E,), jnp.float32),
        "bv": jnp.zeros((E,), jnp.float32),
        "bo": 0.01 * jax.random.normal(ks[4], (E,), jnp.float32),
    }


if __name__ == "__main__":
    B, S, E, HEADS = 2, 8, 32, 4

    root = jax.random.PRNGKey(0)
    kq, kk, kv, kp = jax.random.split(root, 4)
    query = jax.random.normal(kq, (B, S, E), jnp.float32)
    key_t = jax.random.normal(kk, (B, S, E), jnp.float32)
    value = jax.random.normal(kv, (B, S, E), jnp.float32)

    # key_padding_mask: True = ignore that key position (PyTorch convention).
    key_padding_mask = jnp.zeros((B, S), dtype=bool).at[1, -2:].set(True)
    # look_ahead_mask: causal — True above the diagonal = not allowed.
    look_ahead_mask = jnp.triu(jnp.ones((S, S), dtype=bool), k=1)

    params = init_params(kp, E)

    out = mha_forward(query, key_t, value, key_padding_mask, look_ahead_mask,
                      params, heads=HEADS)
    out = jax.block_until_ready(out)
    assert out.shape == (B, S, E)
    assert bool(jnp.all(jnp.isfinite(out)))

    ref = mha_reference(query, key_t, value, key_padding_mask, look_ahead_mask,
                        params, heads=HEADS)
    # bf16 MXU operands + approx reciprocal => loose-ish tolerance vs f32 ref.
    assert bool(jnp.max(jnp.abs(out - ref)) < 5e-2)
    print("KERNEL_OK")
</pallas_src>

<mosaic_0001>
module attributes {stable_mosaic.version = 11 : i64} {
  func.func @mha_kernel(%arg0: i32, %arg1: i32, %arg2: memref<1x8x32xbf16, #tpu.memory_space<vmem>>, %arg3: memref<1x8x32xbf16, #tpu.memory_space<vmem>>, %arg4: memref<1x8x32xbf16, #tpu.memory_space<vmem>>, %arg5: memref<1x1x8xi8, #tpu.memory_space<vmem>>, %arg6: memref<8x8xi8, #tpu.memory_space<vmem>>, %arg7: memref<32x32xbf16, #tpu.memory_space<vmem>>, %arg8: memref<32x32xbf16, #tpu.memory_space<vmem>>, %arg9: memref<32x32xbf16, #tpu.memory_space<vmem>>, %arg10: memref<1x32xf32, #tpu.memory_space<vmem>>, %arg11: memref<1x32xf32, #tpu.memory_space<vmem>>, %arg12: memref<1x32xf32, #tpu.memory_space<vmem>>, %arg13: memref<32x32xbf16, #tpu.memory_space<vmem>>, %arg14: memref<1x32xf32, #tpu.memory_space<vmem>>, %arg15: memref<1x8x32xf32, #tpu.memory_space<vmem>>, %arg16: memref<8x32xbf16, #tpu.memory_space<vmem>>, %arg17: memref<8x32xbf16, #tpu.memory_space<vmem>>, %arg18: memref<8x32xbf16, #tpu.memory_space<vmem>>) attributes {dimension_semantics = [#tpu.dimension_semantics<parallel>, #tpu.dimension_semantics<arbitrary>], iteration_bounds = array<i64: 2, 1>, scalar_prefetch = 0 : i64, scratch_operands = 3 : i64, tpu.core_type = #tpu.core_type<tc>, window_params = [{transform_indices = @transform_0, window_bounds = array<i64: 1, 8, 32>}, {transform_indices = @transform_1, window_bounds = array<i64: 1, 8, 32>}, {transform_indices = @transform_2, window_bounds = array<i64: 1, 8, 32>}, {transform_indices = @transform_3, window_bounds = array<i64: 1, 1, 8>}, {transform_indices = @transform_4, window_bounds = array<i64: 8, 8>}, {pipeline_mode = #tpu.pipeline_mode<synchronous>, transform_indices = @transform_5, window_bounds = array<i64: 32, 32>}, {pipeline_mode = #tpu.pipeline_mode<synchronous>, transform_indices = @transform_6, window_bounds = array<i64: 32, 32>}, {pipeline_mode = #tpu.pipeline_mode<synchronous>, transform_indices = @transform_7, window_bounds = array<i64: 32, 32>}, {pipeline_mode = #tpu.pipeline_mode<synchronous>, transform_indices = @transform_8, window_bounds = array<i64: 1, 32>}, {pipeline_mode = #tpu.pipeline_mode<synchronous>, transform_indices = @transform_9, window_bounds = array<i64: 1, 32>}, {pipeline_mode = #tpu.pipeline_mode<synchronous>, transform_indices = @transform_10, window_bounds = array<i64: 1, 32>}, {pipeline_mode = #tpu.pipeline_mode<synchronous>, transform_indices = @transform_11, window_bounds = array<i64: 32, 32>}, {pipeline_mode = #tpu.pipeline_mode<synchronous>, transform_indices = @transform_12, window_bounds = array<i64: 1, 32>}, {transform_indices = @transform_13, window_bounds = array<i64: 1, 8, 32>}]} {
    %c0_i32 = arith.constant 0 : i32
    %0 = arith.cmpi eq, %arg1, %c0_i32 : i32
    %1 = arith.extui %0 : i1 to i32
    %c0_i32_0 = arith.constant 0 : i32
    %2 = arith.cmpi ne, %1, %c0_i32_0 : i32
    scf.if %2 {
      %c0_61 = arith.constant 0 : index
      %c0_62 = arith.constant 0 : index
      %c0_63 = arith.constant 0 : index
      %111 = vector.load %arg3[%c0_61, %c0_62, %c0_63] : memref<1x8x32xbf16, #tpu.memory_space<vmem>>, vector<1x8x32xbf16>
      %112 = vector.shape_cast %111 : vector<1x8x32xbf16> to vector<8x32xbf16>
      %c0_64 = arith.constant 0 : index
      %c0_65 = arith.constant 0 : index
      %113 = vector.load %arg8[%c0_64, %c0_65] : memref<32x32xbf16, #tpu.memory_space<vmem>>, vector<32x32xbf16>
      %cst_66 = arith.constant dense<0.000000e+00> : vector<8x32xf32>
      %114 = tpu.matmul %112, %113, %cst_66 {dimension_numbers = #tpu.dot_dimension_numbers<[1], [0], [0], [1], [0, 0, 1, 1], [], []>} : vector<8x32xbf16>, vector<32x32xbf16>, vector<8x32xf32> -> vector<8x32xf32>
      %c0_67 = arith.constant 0 : index
      %c0_68 = arith.constant 0 : index
      %115 = vector.load %arg11[%c0_67, %c0_68] : memref<1x32xf32, #tpu.memory_space<vmem>>, vector<1x32xf32>
      %116 = vector.broadcast %115 : vector<1x32xf32> to vector<8x32xf32>
      %117 = arith.addf %114, %116 : vector<8x32xf32>
      %c0_69 = arith.constant 0 : index
      %c0_70 = arith.constant 0 : index
      %c0_71 = arith.constant 0 : index
      %118 = vector.load %arg4[%c0_69, %c0_70, %c0_71] : memref<1x8x32xbf16, #tpu.memory_space<vmem>>, vector<1x8x32xbf16>
      %119 = vector.shape_cast %118 : vector<1x8x32xbf16> to vector<8x32xbf16>
      %c0_72 = arith.constant 0 : index
      %c0_73 = arith.constant 0 : index
      %120 = vector.load %arg9[%c0_72, %c0_73] : memref<32x32xbf16, #tpu.memory_space<vmem>>, vector<32x32xbf16>
      %cst_74 = arith.constant dense<0.000000e+00> : vector<8x32xf32>
      %121 = tpu.matmul %119, %120, %cst_74 {dimension_numbers = #tpu.dot_dimension_numbers<[1], [0], [0], [1], [0, 0, 1, 1], [], []>} : vector<8x32xbf16>, vector<32x32xbf16>, vector<8x32xf32> -> vector<8x32xf32>
      %c0_75 = arith.constant 0 : index
      %c0_76 = arith.constant 0 : index
      %122 = vector.load %arg12[%c0_75, %c0_76] : memref<1x32xf32, #tpu.memory_space<vmem>>, vector<1x32xf32>
      %123 = vector.broadcast %122 : vector<1x32xf32> to vector<8x32xf32>
      %124 = arith.addf %121, %123 : vector<8x32xf32>
      %125 = arith.truncf %117 : vector<8x32xf32> to vector<8x32xbf16>
      %c0_77 = arith.constant 0 : index
      %c0_78 = arith.constant 0 : index
      %126 = vector.load %arg16[%c0_77, %c0_78] : memref<8x32xbf16, #tpu.memory_space<vmem>>, vector<8x32xbf16>
      tpu.vector_store %arg16[%c0_77, %c0_78], %125 {strides = array<i32>} : memref<8x32xbf16, #tpu.memory_space<vmem>>, vector<8x32xbf16>,
      %127 = arith.truncf %124 : vector<8x32xf32> to vector<8x32xbf16>
      %c0_79 = arith.constant 0 : index
      %c0_80 = arith.constant 0 : index
      %128 = vector.load %arg17[%c0_79, %c0_80] : memref<8x32xbf16, #tpu.memory_space<vmem>>, vector<8x32xbf16>
      tpu.vector_store %arg17[%c0_79, %c0_80], %127 {strides = array<i32>} : memref<8x32xbf16, #tpu.memory_space<vmem>>, vector<8x32xbf16>,
    } else {
    }
    %c0 = arith.constant 0 : index
    %c0_1 = arith.constant 0 : index
    %c0_2 = arith.constant 0 : index
    %3 = vector.load %arg2[%c0, %c0_1, %c0_2] : memref<1x8x32xbf16, #tpu.memory_space<vmem>>, vector<1x8x32xbf16>
    %4 = vector.shape_cast %3 : vector<1x8x32xbf16> to vector<8x32xbf16>
    %c0_3 = arith.constant 0 : index
    %c0_4 = arith.constant 0 : index
    %5 = vector.load %arg7[%c0_3, %c0_4] : memref<32x32xbf16, #tpu.memory_space<vmem>>, vector<32x32xbf16>
    %cst = arith.constant dense<0.000000e+00> : vector<8x32xf32>
    %6 = tpu.matmul %4, %5, %cst {dimension_numbers = #tpu.dot_dimension_numbers<[1], [0], [0], [1], [0, 0, 1, 1], [], []>} : vector<8x32xbf16>, vector<32x32xbf16>, vector<8x32xf32> -> vector<8x32xf32>
    %c0_5 = arith.constant 0 : index
    %c0_6 = arith.constant 0 : index
    %7 = vector.load %arg10[%c0_5, %c0_6] : memref<1x32xf32, #tpu.memory_space<vmem>>, vector<1x32xf32>
    %8 = vector.broadcast %7 : vector<1x32xf32> to vector<8x32xf32>
    %9 = arith.addf %6, %8 : vector<8x32xf32>
    %10 = arith.truncf %9 : vector<8x32xf32> to vector<8x32xbf16>
    %c0_7 = arith.constant 0 : index
    %c0_8 = arith.constant 0 : index
    %c0_9 = arith.constant 0 : index
    %11 = vector.load %arg5[%c0_7, %c0_8, %c0_9] : memref<1x1x8xi8, #tpu.memory_space<vmem>>, vector<1x1x8xi8>
    %12 = vector.shape_cast %11 : vector<1x1x8xi8> to vector<1x8xi8>
    %13 = arith.sitofp %12 : vector<1x8xi8> to vector<1x8xf32>
    %cst_10 = arith.constant -1.000000e+09 : f32
    %14 = vector.broadcast %cst_10 : f32 to vector<1x8xf32>
    %15 = arith.mulf %13, %14 : vector<1x8xf32>
    %c0_11 = arith.constant 0 : index
    %c0_12 = arith.constant 0 : index
    %16 = vector.load %arg6[%c0_11, %c0_12] : memref<8x8xi8, #tpu.memory_space<vmem>>, vector<8x8xi8>
    %17 = arith.sitofp %16 : vector<8x8xi8> to vector<8x8xf32>
    %cst_13 = arith.constant -1.000000e+09 : f32
    %18 = vector.broadcast %cst_13 : f32 to vector<8x8xf32>
    %19 = arith.mulf %17, %18 : vector<8x8xf32>
    %20 = vector.broadcast %15 : vector<1x8xf32> to vector<8x8xf32>
    %21 = arith.addf %19, %20 : vector<8x8xf32>
    %c0_14 = arith.constant 0 : index
    %c0_15 = arith.constant 0 : index
    %22 = vector.load %arg16[%c0_14, %c0_15] : memref<8x32xbf16, #tpu.memory_space<vmem>>, vector<8x8xbf16>
    %c0_16 = arith.constant 0 : index
    %c0_17 = arith.constant 0 : index
    %23 = vector.load %arg17[%c0_16, %c0_17] : memref<8x32xbf16, #tpu.memory_space<vmem>>, vector<8x8xbf16>
    %24 = vector.extract_strided_slice %10 {offsets = [0, 0], sizes = [8, 8], strides = [1, 1]} : vector<8x32xbf16> to vector<8x8xbf16>
    %25 = tpu.transpose %22, [1, 0] : vector<8x8xbf16> -> vector<8x8xbf16>
    %cst_18 = arith.constant dense<0.000000e+00> : vector<8x8xf32>
    %26 = tpu.matmul %24, %25, %cst_18 {dimension_numbers = #tpu.dot_dimension_numbers<[1], [0], [0], [1], [0, 0, 1, 1], [], []>} : vector<8x8xbf16>, vector<8x8xbf16>, vector<8x8xf32> -> vector<8x8xf32>
    %27 = arith.addf %26, %21 : vector<8x8xf32>
    %cst_19 = arith.constant dense<0xFF800000> : vector<8xf32>
    %28 = vector.multi_reduction <maximumf>, %27, %cst_19 [1] : vector<8x8xf32> to vector<8xf32>
    %29 = vector.shape_cast %28 : vector<8xf32> to vector<8x1xf32>
    %30 = vector.broadcast %29 : vector<8x1xf32> to vector<8x8xf32>
    %31 = arith.subf %27, %30 : vector<8x8xf32>
    %32 = math.exp %31 : vector<8x8xf32>
    %cst_20 = arith.constant dense<0.000000e+00> : vector<8xf32>
    %33 = vector.multi_reduction <add>, %32, %cst_20 [1] : vector<8x8xf32> to vector<8xf32>
    %34 = vector.shape_cast %33 : vector<8xf32> to vector<8x1xf32>
    %35 = arith.truncf %32 : vector<8x8xf32> to vector<8x8xbf16>
    %cst_21 = arith.constant dense<0.000000e+00> : vector<8x8xf32>
    %36 = tpu.matmul %35, %23, %cst_21 {dimension_numbers = #tpu.dot_dimension_numbers<[1], [0], [0], [1], [0, 0, 1, 1], [], []>} : vector<8x8xbf16>, vector<8x8xbf16>, vector<8x8xf32> -> vector<8x8xf32>
    %37 = tpu.reciprocal %34 {approx = true} : vector<8x1xf32> -> vector<8x1xf32>
    %38 = vector.broadcast %37 : vector<8x1xf32> to vector<8x8xf32>
    %39 = arith.mulf %36, %38 : vector<8x8xf32>
    %40 = arith.truncf %39 : vector<8x8xf32> to vector<8x8xbf16>
    %c0_22 = arith.constant 0 : index
    %c0_23 = arith.constant 0 : index
    %41 = vector.load %arg18[%c0_22, %c0_23] : memref<8x32xbf16, #tpu.memory_space<vmem>>, vector<8x8xbf16>
    tpu.vector_store %arg18[%c0_22, %c0_23], %40 {strides = array<i32>} : memref<8x32xbf16, #tpu.memory_space<vmem>>, vector<8x8xbf16>,
    %c0_24 = arith.constant 0 : index
    %c8 = arith.constant 8 : index
    %42 = vector.load %arg16[%c0_24, %c8] : memref<8x32xbf16, #tpu.memory_space<vmem>>, vector<8x8xbf16>
    %c0_25 = arith.constant 0 : index
    %c8_26 = arith.constant 8 : index
    %43 = vector.load %arg17[%c0_25, %c8_26] : memref<8x32xbf16, #tpu.memory_space<vmem>>, vector<8x8xbf16>
    %44 = vector.extract_strided_slice %10 {offsets = [0, 8], sizes = [8, 8], strides = [1, 1]} : vector<8x32xbf16> to vector<8x8xbf16>
    %45 = tpu.transpose %42, [1, 0] : vector<8x8xbf16> -> vector<8x8xbf16>
    %cst_27 = arith.constant dense<0.000000e+00> : vector<8x8xf32>
    %46 = tpu.matmul %44, %45, %cst_27 {dimension_numbers = #tpu.dot_dimension_numbers<[1], [0], [0], [1], [0, 0, 1, 1], [], []>} : vector<8x8xbf16>, vector<8x8xbf16>, vector<8x8xf32> -> vector<8x8xf32>
    %47 = arith.addf %46, %21 : vector<8x8xf32>
    %cst_28 = arith.constant dense<0xFF800000> : vector<8xf32>
    %48 = vector.multi_reduction <maximumf>, %47, %cst_28 [1] : vector<8x8xf32> to vector<8xf32>
    %49 = vector.shape_cast %48 : vector<8xf32> to vector<8x1xf32>
    %50 = vector.broadcast %49 : vector<8x1xf32> to vector<8x8xf32>
    %51 = arith.subf %47, %50 : vector<8x8xf32>
    %52 = math.exp %51 : vector<8x8xf32>
    %cst_29 = arith.constant dense<0.000000e+00> : vector<8xf32>
    %53 = vector.multi_reduction <add>, %52, %cst_29 [1] : vector<8x8xf32> to vector<8xf32>
    %54 = vector.shape_cast %53 : vector<8xf32> to vector<8x1xf32>
    %55 = arith.truncf %52 : vector<8x8xf32> to vector<8x8xbf16>
    %cst_30 = arith.constant dense<0.000000e+00> : vector<8x8xf32>
    %56 = tpu.matmul %55, %43, %cst_30 {dimension_numbers = #tpu.dot_dimension_numbers<[1], [0], [0], [1], [0, 0, 1, 1], [], []>} : vector<8x8xbf16>, vector<8x8xbf16>, vector<8x8xf32> -> vector<8x8xf32>
    %57 = tpu.reciprocal %54 {approx = true} : vector<8x1xf32> -> vector<8x1xf32>
    %58 = vector.broadcast %57 : vector<8x1xf32> to vector<8x8xf32>
    %59 = arith.mulf %56, %58 : vector<8x8xf32>
    %60 = arith.truncf %59 : vector<8x8xf32> to vector<8x8xbf16>
    %c0_31 = arith.constant 0 : index
    %c8_32 = arith.constant 8 : index
    %61 = vector.load %arg18[%c0_31, %c8_32] : memref<8x32xbf16, #tpu.memory_space<vmem>>, vector<8x8xbf16>
    tpu.vector_store %arg18[%c0_31, %c8_32], %60 {strides = array<i32>} : memref<8x32xbf16, #tpu.memory_space<vmem>>, vector<8x8xbf16>,
    %c0_33 = arith.constant 0 : index
    %c16 = arith.constant 16 : index
    %62 = vector.load %arg16[%c0_33, %c16] : memref<8x32xbf16, #tpu.memory_space<vmem>>, vector<8x8xbf16>
    %c0_34 = arith.constant 0 : index
    %c16_35 = arith.constant 16 : index
    %63 = vector.load %arg17[%c0_34, %c16_35] : memref<8x32xbf16, #tpu.memory_space<vmem>>, vector<8x8xbf16>
    %64 = vector.extract_strided_slice %10 {offsets = [0, 16], sizes = [8, 8], strides = [1, 1]} : vector<8x32xbf16> to vector<8x8xbf16>
    %65 = tpu.transpose %62, [1, 0] : vector<8x8xbf16> -> vector<8x8xbf16>
    %cst_36 = arith.constant dense<0.000000e+00> : vector<8x8xf32>
    %66 = tpu.matmul %64, %65, %cst_36 {dimension_numbers = #tpu.dot_dimension_numbers<[1], [0], [0], [1], [0, 0, 1, 1], [], []>} : vector<8x8xbf16>, vector<8x8xbf16>, vector<8x8xf32> -> vector<8x8xf32>
    %67 = arith.addf %66, %21 : vector<8x8xf32>
    %cst_37 = arith.constant dense<0xFF800000> : vector<8xf32>
    %68 = vector.multi_reduction <maximumf>, %67, %cst_37 [1] : vector<8x8xf32> to vector<8xf32>
    %69 = vector.shape_cast %68 : vector<8xf32> to vector<8x1xf32>
    %70 = vector.broadcast %69 : vector<8x1xf32> to vector<8x8xf32>
    %71 = arith.subf %67, %70 : vector<8x8xf32>
    %72 = math.exp %71 : vector<8x8xf32>
    %cst_38 = arith.constant dense<0.000000e+00> : vector<8xf32>
    %73 = vector.multi_reduction <add>, %72, %cst_38 [1] : vector<8x8xf32> to vector<8xf32>
    %74 = vector.shape_cast %73 : vector<8xf32> to vector<8x1xf32>
    %75 = arith.truncf %72 : vector<8x8xf32> to vector<8x8xbf16>
    %cst_39 = arith.constant dense<0.000000e+00> : vector<8x8xf32>
    %76 = tpu.matmul %75, %63, %cst_39 {dimension_numbers = #tpu.dot_dimension_numbers<[1], [0], [0], [1], [0, 0, 1, 1], [], []>} : vector<8x8xbf16>, vector<8x8xbf16>, vector<8x8xf32> -> vector<8x8xf32>
    %77 = tpu.reciprocal %74 {approx = true} : vector<8x1xf32> -> vector<8x1xf32>
    %78 = vector.broadcast %77 : vector<8x1xf32> to vector<8x8xf32>
    %79 = arith.mulf %76, %78 : vector<8x8xf32>
    %80 = arith.truncf %79 : vector<8x8xf32> to vector<8x8xbf16>
    %c0_40 = arith.constant 0 : index
    %c16_41 = arith.constant 16 : index
    %81 = vector.load %arg18[%c0_40, %c16_41] : memref<8x32xbf16, #tpu.memory_space<vmem>>, vector<8x8xbf16>
    tpu.vector_store %arg18[%c0_40, %c16_41], %80 {strides = array<i32>} : memref<8x32xbf16, #tpu.memory_space<vmem>>, vector<8x8xbf16>,
    %c0_42 = arith.constant 0 : index
    %c24 = arith.constant 24 : index
    %82 = vector.load %arg16[%c0_42, %c24] : memref<8x32xbf16, #tpu.memory_space<vmem>>, vector<8x8xbf16>
    %c0_43 = arith.constant 0 : index
    %c24_44 = arith.constant 24 : index
    %83 = vector.load %arg17[%c0_43, %c24_44] : memref<8x32xbf16, #tpu.memory_space<vmem>>, vector<8x8xbf16>
    %84 = vector.extract_strided_slice %10 {offsets = [0, 24], sizes = [8, 8], strides = [1, 1]} : vector<8x32xbf16> to vector<8x8xbf16>
    %85 = tpu.transpose %82, [1, 0] : vector<8x8xbf16> -> vector<8x8xbf16>
    %cst_45 = arith.constant dense<0.000000e+00> : vector<8x8xf32>
    %86 = tpu.matmul %84, %85, %cst_45 {dimension_numbers = #tpu.dot_dimension_numbers<[1], [0], [0], [1], [0, 0, 1, 1], [], []>} : vector<8x8xbf16>, vector<8x8xbf16>, vector<8x8xf32> -> vector<8x8xf32>
    %87 = arith.addf %86, %21 : vector<8x8xf32>
    %cst_46 = arith.constant dense<0xFF800000> : vector<8xf32>
    %88 = vector.multi_reduction <maximumf>, %87, %cst_46 [1] : vector<8x8xf32> to vector<8xf32>
    %89 = vector.shape_cast %88 : vector<8xf32> to vector<8x1xf32>
    %90 = vector.broadcast %89 : vector<8x1xf32> to vector<8x8xf32>
    %91 = arith.subf %87, %90 : vector<8x8xf32>
    %92 = math.exp %91 : vector<8x8xf32>
    %cst_47 = arith.constant dense<0.000000e+00> : vector<8xf32>
    %93 = vector.multi_reduction <add>, %92, %cst_47 [1] : vector<8x8xf32> to vector<8xf32>
    %94 = vector.shape_cast %93 : vector<8xf32> to vector<8x1xf32>
    %95 = arith.truncf %92 : vector<8x8xf32> to vector<8x8xbf16>
    %cst_48 = arith.constant dense<0.000000e+00> : vector<8x8xf32>
    %96 = tpu.matmul %95, %83, %cst_48 {dimension_numbers = #tpu.dot_dimension_numbers<[1], [0], [0], [1], [0, 0, 1, 1], [], []>} : vector<8x8xbf16>, vector<8x8xbf16>, vector<8x8xf32> -> vector<8x8xf32>
    %97 = tpu.reciprocal %94 {approx = true} : vector<8x1xf32> -> vector<8x1xf32>
    %98 = vector.broadcast %97 : vector<8x1xf32> to vector<8x8xf32>
    %99 = arith.mulf %96, %98 : vector<8x8xf32>
    %100 = arith.truncf %99 : vector<8x8xf32> to vector<8x8xbf16>
    %c0_49 = arith.constant 0 : index
    %c24_50 = arith.constant 24 : index
    %101 = vector.load %arg18[%c0_49, %c24_50] : memref<8x32xbf16, #tpu.memory_space<vmem>>, vector<8x8xbf16>
    tpu.vector_store %arg18[%c0_49, %c24_50], %100 {strides = array<i32>} : memref<8x32xbf16, #tpu.memory_space<vmem>>, vector<8x8xbf16>,
    %c0_51 = arith.constant 0 : index
    %c0_52 = arith.constant 0 : index
    %102 = vector.load %arg18[%c0_51, %c0_52] : memref<8x32xbf16, #tpu.memory_space<vmem>>, vector<8x32xbf16>
    %c0_53 = arith.constant 0 : index
    %c0_54 = arith.constant 0 : index
    %103 = vector.load %arg13[%c0_53, %c0_54] : memref<32x32xbf16, #tpu.memory_space<vmem>>, vector<32x32xbf16>
    %cst_55 = arith.constant dense<0.000000e+00> : vector<8x32xf32>
    %104 = tpu.matmul %102, %103, %cst_55 {dimension_numbers = #tpu.dot_dimension_numbers<[1], [0], [0], [1], [0, 0, 1, 1], [], []>} : vector<8x32xbf16>, vector<32x32xbf16>, vector<8x32xf32> -> vector<8x32xf32>
    %c0_56 = arith.constant 0 : index
    %c0_57 = arith.constant 0 : index
    %105 = vector.load %arg14[%c0_56, %c0_57] : memref<1x32xf32, #tpu.memory_space<vmem>>, vector<1x32xf32>
    %106 = vector.broadcast %105 : vector<1x32xf32> to vector<8x32xf32>
    %107 = arith.addf %104, %106 : vector<8x32xf32>
    %c0_58 = arith.constant 0 : index
    %c0_59 = arith.constant 0 : index
    %c0_60 = arith.constant 0 : index
    %108 = vector.load %arg15[%c0_58, %c0_59, %c0_60] : memref<1x8x32xf32, #tpu.memory_space<vmem>>, vector<1x8x32xf32>
    %109 = vector.shape_cast %108 : vector<1x8x32xf32> to vector<8x32xf32>
    %110 = vector.shape_cast %107 : vector<8x32xf32> to vector<1x8x32xf32>
    tpu.vector_store %arg15[%c0_58, %c0_59, %c0_60], %110 {strides = array<i32>} : memref<1x8x32xf32, #tpu.memory_space<vmem>>, vector<1x8x32xf32>,
    return
  }
  func.func @transform_0(%arg0: i32, %arg1: i32) -> (i32, i32, i32) {
    %c0_i32 = arith.constant 0 : i32
    %c0_i32_0 = arith.constant 0 : i32
    return %arg0, %arg1, %c0_i32 : i32, i32, i32
  }
  func.func @transform_1(%arg0: i32, %arg1: i32) -> (i32, i32, i32) {
    %c0_i32 = arith.constant 0 : i32
    %c0_i32_0 = arith.constant 0 : i32
    %c0_i32_1 = arith.constant 0 : i32
    return %arg0, %c0_i32, %c0_i32_0 : i32, i32, i32
  }
  func.func @transform_2(%arg0: i32, %arg1: i32) -> (i32, i32, i32) {
    %c0_i32 = arith.constant 0 : i32
    %c0_i32_0 = arith.constant 0 : i32
    %c0_i32_1 = arith.constant 0 : i32
    return %arg0, %c0_i32, %c0_i32_0 : i32, i32, i32
  }
  func.func @transform_3(%arg0: i32, %arg1: i32) -> (i32, i32, i32) {
    %c0_i32 = arith.constant 0 : i32
    %c0_i32_0 = arith.constant 0 : i32
    %c0_i32_1 = arith.constant 0 : i32
    return %arg0, %c0_i32, %c0_i32_0 : i32, i32, i32
  }
  func.func @transform_4(%arg0: i32, %arg1: i32) -> (i32, i32) {
    %c0_i32 = arith.constant 0 : i32
    %c0_i32_0 = arith.constant 0 : i32
    return %arg1, %c0_i32 : i32, i32
  }
  func.func @transform_5(%arg0: i32, %arg1: i32) -> (i32, i32) {
    %c0_i32 = arith.constant 0 : i32
    %c0_i32_0 = arith.constant 0 : i32
    %c0_i32_1 = arith.constant 0 : i32
    return %c0_i32, %c0_i32_0 : i32, i32
  }
  func.func @transform_6(%arg0: i32, %arg1: i32) -> (i32, i32) {
    %c0_i32 = arith.constant 0 : i32
    %c0_i32_0 = arith.constant 0 : i32
    %c0_i32_1 = arith.constant 0 : i32
    return %c0_i32, %c0_i32_0 : i32, i32
  }
  func.func @transform_7(%arg0: i32, %arg1: i32) -> (i32, i32) {
    %c0_i32 = arith.constant 0 : i32
    %c0_i32_0 = arith.constant 0 : i32
    %c0_i32_1 = arith.constant 0 : i32
    return %c0_i32, %c0_i32_0 : i32, i32
  }
  func.func @transform_8(%arg0: i32, %arg1: i32) -> (i32, i32) {
    %c0_i32 = arith.constant 0 : i32
    %c0_i32_0 = arith.constant 0 : i32
    %c0_i32_1 = arith.constant 0 : i32
    return %c0_i32, %c0_i32_0 : i32, i32
  }
  func.func @transform_9(%arg0: i32, %arg1: i32) -> (i32, i32) {
    %c0_i32 = arith.constant 0 : i32
    %c0_i32_0 = arith.constant 0 : i32
    %c0_i32_1 = arith.constant 0 : i32
    return %c0_i32, %c0_i32_0 : i32, i32
  }
  func.func @transform_10(%arg0: i32, %arg1: i32) -> (i32, i32) {
    %c0_i32 = arith.constant 0 : i32
    %c0_i32_0 = arith.constant 0 : i32
    %c0_i32_1 = arith.constant 0 : i32
    return %c0_i32, %c0_i32_0 : i32, i32
  }
  func.func @transform_11(%arg0: i32, %arg1: i32) -> (i32, i32) {
    %c0_i32 = arith.constant 0 : i32
    %c0_i32_0 = arith.constant 0 : i32
    %c0_i32_1 = arith.constant 0 : i32
    return %c0_i32, %c0_i32_0 : i32, i32
  }
  func.func @transform_12(%arg0: i32, %arg1: i32) -> (i32, i32) {
    %c0_i32 = arith.constant 0 : i32
    %c0_i32_0 = arith.constant 0 : i32
    %c0_i32_1 = arith.constant 0 : i32
    return %c0_i32, %c0_i32_0 : i32, i32
  }
  func.func @transform_13(%arg0: i32, %arg1: i32) -> (i32, i32, i32) {
    %c0_i32 = arith.constant 0 : i32
    %c0_i32_0 = arith.constant 0 : i32
    return %arg0, %arg1, %c0_i32 : i32, i32, i32
  }
}

</mosaic_0001>

<bundles_post_ra>
// kernel: tpu_custom_call.1
= control target key start
LH: loop header
LB: loop body
LE: loop exit
PB: predicated region body
PF: predicated region fallthrough
CT: control target
= control target key end

     0   :  { %s2614_s0 = inlined_call_operand.hbm [shape: bf16[2,8,32], index: 0, kind: input, shape index: {}]   ;;  %s2615_s1 = inlined_call_operand.hbm [shape: bf16[2,8,32], index: 1, kind: input, shape index: {}]   ;;  %s2616_s2 = inlined_call_operand.hbm [shape: bf16[2,8,32], index: 2, kind: input, shape index: {}]   ;;  %s2617_s3 = inlined_call_operand.vmem [shape: s8[2,1,8], index: 3, kind: input, shape index: {}]   ;;  %s2618_s4 = inlined_call_operand.vmem [shape: s8[8,8], index: 4, kind: input, shape index: {}]   ;;  %s2619_s5 = inlined_call_operand.hbm [shape: bf16[32,32], index: 5, kind: input, shape index: {}]   ;;  %s2620_s6 = inlined_call_operand.hbm [shape: bf16[32,32], index: 6, kind: input, shape index: {}]   ;;  %s2621_s7 = inlined_call_operand.hbm [shape: bf16[32,32], index: 7, kind: input, shape index: {}]   ;;  %s2622_s8 = inlined_call_operand.vmem [shape: f32[1,32], index: 8, kind: input, shape index: {}]   ;;  %s2623_s9 = inlined_call_operand.vmem [shape: f32[1,32], index: 9, kind: input, shape index: {}]   ;;  %s2624_s10 = inlined_call_operand.vmem [shape: f32[1,32], index: 10, kind: input, shape index: {}]   ;;  %s2625_s11 = inlined_call_operand.vmem [shape: bf16[32,32], index: 11, kind: input, shape index: {}]   ;;  %s2626_s12 = inlined_call_operand.vmem [shape: f32[1,32], index: 12, kind: input, shape index: {}]   ;;  %s2627_s13 = inlined_call_operand.hbm [shape: f32[2,8,32], index: 13, kind: output, shape index: {}]  }
   0x1   :  { %2649 = sst [smem:[#allocation29_spill]] %s2615_s1 }
   0x2   :  { %2650 = sst [smem:[#allocation30_spill]] %s2618_s4 }
   0x3   :  { %2651 = sst [smem:[#allocation31_spill]] %s2619_s5 }
   0x4   :  { %2652 = sst [smem:[#allocation32_spill]] %s2620_s6 }
   0x5   :  { %2653 = sst [smem:[#allocation33_spill]] %s2625_s11 }
   0x6   :  { %2654 = sst [smem:[#allocation34_spill]] %s2626_s12 }
   0x7   :  { %2655 = sst [smem:[#allocation35_spill]] %s2627_s13 }
   0x8   :  { %18 = vsyncpa [#allocation6], 0 }
   0x9   :  { %20 = vsyncpa [#allocation6 + $0x1], 0 }
   0xa   :  { %21 = vsyncpa [#allocation9], 0 }
   0xb   :  { %23 = vsyncpa [#allocation9 + $0x1], 0 }
   0xc   :  { %24 = vsyncpa [#allocation12], 0 }
   0xd   :  { %25 = vsyncpa [#allocation15], 0 }
   0xe   :  { %26 = vsyncpa [#allocation7], 0 }
   0xf   :  { %28 = vsyncpa [#allocation7 + $0x1], 0  ;;  %s2254_s25 = smov 0   ;;  %s2256_s26 = smov 0  }
  0x10   :  { %s2258_s27 = smov 0   ;;  %s2260_s28 = smov 0  }
  0x11   :  { %s2262_s29 = smov 0   ;;  %s2264_s30 = smov 0  }
  0x12 LB: > { %2656 = sst [smem:[#allocation22_spill]] %s2145_s25  ;;  %s2285_s14 = sadd.s32 4294967295, %s2165_s30   ;;  %s2165_s30 = sphi %s2264_s30, %s34_s30   ;;  %s2161_s29 = sphi %s2262_s29, %s2699_s29   ;;  %s2157_s28 = sphi %s2260_s28, %s2698_s28   ;;  %s2153_s27 = sphi %s2258_s27, %s2702_s27   ;;  %s2149_s26 = sphi %s2256_s26, %s2701_s26   ;;  %s2145_s25 = sphi %s2254_s25, %s2700_s25  }
  0x13   : > { %2657 = sst [smem:[#allocation23_spill]] %s2161_s29  ;;  %s1599_s15 = sadd.s32 4294967294, %s2165_s30  }
  0x14   : > { %2658 = sst [smem:[#allocation24_spill]] %s2165_s30  ;;  %p68_p0 = scmp.ne.s32.totalorder %s2149_s26, %s2145_s25 }
  0x15   : > { %p2643_p1 = scmp.eq.s32.totalorder %s2285_s14, 0  ;;  %p372_p3 = scmp.eq.s32.totalorder %s1599_s15, 1 }
  0x16   : > { %p1600_p5 = scmp.ge.s32.totalorder %s2165_s30, 1  ;;  %p379_p7 = scmp.lt.s32.totalorder %s2165_s30, 3 }
  0x17   : > { %p2294_p4 = por %p2643_p1, %p68_p0  ;;  %p2299_p6 = por %p372_p3, %p68_p0 }
  0x18   : > { %p2304_p8 = pnand %p1600_p5, %p379_p7  ;;  %s2167_s19 = smov [#allocation11]  }
  0x19   : > { %s2659_s16 = scalar_select %p2294_p4, 1, 0 }
  0x1a   : > { %s2660_s17 = scalar_select %p2299_p6, 1, 0 }
  0x1b   : > { %s2662_s18 = scalar_select %p2304_p8, 1, 0 }
  0x1c   : > { %2661 = sst [smem:[#allocation25_spill]] %s2660_s17  ;;  %s398_s20 = sshll.u32 %s2167_s19, 4  ;;  %s399_s20 = int_to_ptr.vmem [resolvable:$true] %s398_s20 }
  0x1d   : > { %p1788_p9 = pneg %p2304_p8  ;;  %s46_s22 = sadd.s32 1, %s2161_s29 }
  0x1e   : > { %s1922_s23 = scalar_lea.vmem %s399_s20, 256  ;;  %p1930_p5 = scmp.lt.s32.totalorder %s399_s20, %s399_s20 }
  0x1f   : > { %p2313_p11 = pnand %p1788_p9, %p2643_p1  ;;  %p1923_p13 = scmp.ne.s32.totalorder %s399_s20, %s1922_s23 }
  0x20   : > { %p1931_p7 = scmp.lt.s32.totalorder %s1922_s23, %s1922_s23 }
  0x21   : > { %p2644_p12 = pneg %p2313_p11 }
  0x22   : > { %p1932_p2 = por %p1931_p7, %p1930_p5 }
  0x23   : > { %p1925_p0 = pnand %p1923_p13, %p2644_p12 }
  0x25   : > { %p1926_p3 = pneg %p1925_p0 }
  0x27   : > { %p1933_p10 = pnand %p1932_p2, %p1926_p3 }
  0x29   : > { %1936 = shalt.err (!%p1933_p10)
}
  0x2a   : > { %s2631_s24 = smov 64   ;;  %s2633_s15 = smov 4  }
  0x2b   : > { %s2664_s5 = sld [smem:[#allocation31_spill]]  ;;  %p48_p2 = scmp.ge.s32.totalorder %s46_s22, 2 }
  0x2c   : > { %s55_s17 = sadd.s32 1, %s2153_s27  ;;  %p62_p9 = scmp.ne.s32.totalorder %s2153_s27, %s2149_s26 }
  0x2d   : > { %p63_p10 = scmp.eq.s32.totalorder %s2165_s30, 0  ;;  %s2704_s22 = smov (%p48_p2, %s46_s22), 0 }
  0x2e   : > { %2665 = sst [smem:[#allocation26_spill]] %s2704_s22  ;;  %p2666_p0 = scmp.eq.s32.totalorder %s2285_s14, 1 }
  0x2f   : > { %p64_p13 = por %p63_p10, %p62_p9  ;;  %s50_s13 = ssub.s32 %s2161_s29, %s2704_s22 }
  0x30   : > { %p2339_p3 = por %p2666_p0, %p62_p9  ;;  %p1815_p5 = scmp.lt.s32.totalorder %s2165_s30, 2 }
  0x31   : > { %1791 = dma.hbm_to_vmem [thread:$0]  (!%p2313_p11), %s2664_s5, 256, %s399_s20, [#allocation12], %s2631_s24, %s2631_s24, %s2633_s15  }
  0x32   : > { %s2667_s25 = scalar_select %p2339_p3, 1, 0 }
  0x33   : > { %p53_p7 = scmp.eq.s32.totalorder %s50_s13, 0  ;;  %s2638_s12 = sand.u32 1, %s2153_s27  }
  0x34   : > { %2668 = sst [smem:[#allocation27_spill]] %s2667_s25  ;;  %s2349_s20 = sshll.u32 %s2638_s12, 2 }
  0x35   : > { %s2352_s19 = sshll.u32 %s2161_s29, 6  ;;  %p2357_p2 = pnand %p1815_p5, %p64_p13 }
  0x36   : > { %s2355_s23 = scalar_select %p53_p7, %s2153_s27, %s55_s17  }
  0x37   : > { %s472_s15 = sand.u32 1, %s2165_s30   ;;  %s2671_s1 = sld [smem:[#allocation29_spill]] }
  0x38   : > { %2669 = sst [smem:[#allocation28_spill]] %s2355_s23  ;;  %s476_s25 = scalar_lea.vmem [#allocation8], %s2349_s20 }
  0x39   : > { %s483_s12 = sshll.u32 %s476_s25, 4  ;;  %s2170_s11 = smov [#allocation13]   ;;  %s484_s12 = int_to_ptr.vmem [resolvable:$true] %s483_s12 }
  0x3a   : > { %s411_s29 = sshll.u32 %s2170_s11, 4  ;;  %s2367_s4 = scalar_lea.sflag [#allocation9], %s472_s15  ;;  %s412_s29 = int_to_ptr.vmem [resolvable:$true] %s411_s29 }
  0x3b   : > { %p2645_p9 = pneg %p2357_p2  ;;  %s1950_s17 = scalar_lea.vmem %s484_s12, 64 }
  0x3c   : > { %p1951_p10 = scmp.ne.s32.totalorder %s484_s12, %s1950_s17  ;;  %s2171_s23 = smov [#allocation8]  }
  0x3d   : > { %s481_s13 = scalar_lea.hbm %s2671_s1, %s2352_s19  ;;  %s1955_s30 = sshll.u32 %s2171_s23, 4  ;;  %s1956_s30 = int_to_ptr.vmem [resolvable:$false] %s1955_s30 }
  0x3e   : > { %p1953_p13 = pnand %p1951_p10, %p2645_p9  ;;  %s1957_s5 = scalar_lea.vmem %s1956_s30, 128 }
  0x3f   : > { %p1958_p5 = scmp.lt.s32.totalorder %s484_s12, %s1956_s30  ;;  %p1959_p7 = scmp.lt.s32.totalorder %s1957_s5, %s1950_s17 }
  0x40   : > { %p1954_p0 = pneg %p1953_p13 }
  0x41   : > { %p1960_p1 = por %p1959_p7, %p1958_p5 }
  0x43   : > { %p1961_p12 = pnand %p1960_p1, %p1954_p0 }
  0x45   : > { %1964 = shalt.err (!%p1961_p12)
}
  0x46   : > { %1804 = dma.hbm_to_vmem [thread:$0]  (!%p2357_p2), %s481_s13, 64, %s484_s12, %s2367_s4  }
  0x47   : > { %s1976_s11 = scalar_lea.vmem %s412_s29, 256  ;;  %p2672_p10 = pneg %p2313_p11 }
  0x48   : > { %p1977_p6 = scmp.ne.s32.totalorder %s412_s29, %s1976_s11  ;;  %p1984_p3 = scmp.lt.s32.totalorder %s412_s29, %s412_s29 }
  0x49   : > { %p1985_p4 = scmp.lt.s32.totalorder %s1976_s11, %s1976_s11 }
  0x4a   : > { %p1979_p13 = pnand %p1977_p6, %p2672_p10 }
  0x4b   : > { %p1986_p8 = por %p1985_p4, %p1984_p3 }
  0x4c   : > { %p1980_p9 = pneg %p1979_p13 }
  0x4e   : > { %p1987_p5 = pnand %p1986_p8, %p1980_p9 }
  0x50   : > { %1990 = shalt.err (!%p1987_p5)
}
  0x51   : > { %s2673_s25 = smov 4   ;;  %s2674_s30 = smov 64  }
  0x52   : > { %s2675_s6 = sld [smem:[#allocation32_spill]]  ;;  %s2172_s12 = smov [#allocation14]  }
  0x53   : > { %s424_s23 = sshll.u32 %s2172_s12, 4  ;;  %p2676_p6 = pmov %p2672_p10  ;;  %s425_s23 = int_to_ptr.vmem [resolvable:$true] %s424_s23 }
  0x54   : > { %s2002_s13 = scalar_lea.vmem %s425_s23, 256  ;;  %p2010_p12 = scmp.lt.s32.totalorder %s425_s23, %s425_s23 }
  0x55   : > { %p2003_p1 = scmp.ne.s32.totalorder %s425_s23, %s2002_s13  ;;  %p2011_p3 = scmp.lt.s32.totalorder %s2002_s13, %s2002_s13 }
  0x57   : > { %p2005_p4 = pnand %p2003_p1, %p2676_p6  ;;  %p2012_p9 = por %p2011_p3, %p2010_p12 }
  0x58   : > { %1794 = dma.hbm_to_vmem [thread:$0]  (!%p2313_p11), %s2675_s6, 256, %s412_s29, [#allocation12], %s2674_s30, %s2674_s30, %s2673_s25  }
  0x59   : > { %p2006_p8 = pneg %p2005_p4 }
  0x5b   : > { %p2013_p0 = pnand %p2012_p9, %p2006_p8 }
  0x5d   : > { %2016 = shalt.err (!%p2013_p0)
}
  0x5e   : > { %1797 = dma.hbm_to_vmem [thread:$0]  (!%p2313_p11), %s2621_s7, 256, %s425_s23, [#allocation15], %s2674_s30, %s2674_s30, %s2673_s25  }
  0x5f   : > { %s463_s22 = scalar_lea.hbm %s2614_s0, %s2352_s19  ;;  %s457_s15 = scalar_lea.vmem [#allocation5], %s2349_s20 }
  0x60   : > { %s465_s12 = sshll.u32 %s457_s15, 4  ;;  %s2677_s13 = sand.u32 1, %s2153_s27   ;;  %s466_s12 = int_to_ptr.vmem [resolvable:$true] %s465_s12 }
  0x61   : > { %s454_s21 = scalar_lea.sflag [#allocation6], %s2677_s13  ;;  %s2030_s1 = scalar_lea.vmem %s466_s12, 64 }
  0x62   : > { %p2031_p7 = scmp.ne.s32.totalorder %s466_s12, %s2030_s1  ;;  %p2678_p10 = pneg %p2357_p2 }
  0x63   : > { %s2173_s29 = smov [#allocation5]  }
  0x64   : > { %p2033_p13 = pnand %p2031_p7, %p2678_p10  ;;  %s2035_s17 = sshll.u32 %s2173_s29, 4  ;;  %s2036_s17 = int_to_ptr.vmem [resolvable:$false] %s2035_s17 }
  0x65   : > { %s2037_s6 = scalar_lea.vmem %s2036_s17, 128  ;;  %p2038_p11 = scmp.lt.s32.totalorder %s466_s12, %s2036_s17 }
  0x66   : > { %p2034_p5 = pneg %p2033_p13  ;;  %p2039_p1 = scmp.lt.s32.totalorder %s2037_s6, %s2030_s1 }
  0x68   : > { %p2040_p6 = por %p2039_p1, %p2038_p11 }
  0x6a   : > { %p2041_p4 = pnand %p2040_p6, %p2034_p5 }
  0x6c   : > { %2044 = shalt.err (!%p2041_p4)
}
  0x6d   : > { %1801 = dma.hbm_to_vmem [thread:$0]  (!%p2357_p2), %s463_s22, 64, %s466_s12, %s454_s21  }
  0x6e   : > { %s499_s23 = scalar_lea.hbm %s2616_s2, %s2352_s19  ;;  %s494_s5 = scalar_lea.vmem [#allocation10], %s2349_s20 }
  0x6f   : > { %s501_s11 = sshll.u32 %s494_s5, 4  ;;  %p2679_p12 = pmov %p2678_p10  ;;  %s502_s11 = int_to_ptr.vmem [resolvable:$true] %s501_s11 }
  0x70   : > { %s2058_s15 = scalar_lea.vmem %s502_s11, 64  ;;  %s2174_s1 = smov [#allocation10]  }
  0x71   : > { %p2059_p8 = scmp.ne.s32.totalorder %s502_s11, %s2058_s15  ;;  %s2063_s6 = sshll.u32 %s2174_s1, 4  ;;  %s2064_s6 = int_to_ptr.vmem [resolvable:$false] %s2063_s6 }
  0x72   : > { %s2065_s13 = scalar_lea.vmem %s2064_s6, 128  ;;  %p2066_p0 = scmp.lt.s32.totalorder %s502_s11, %s2064_s6 }
  0x73   : > { %p2061_p3 = pnand %p2059_p8, %p2679_p12  ;;  %p2067_p7 = scmp.lt.s32.totalorder %s2065_s13, %s2058_s15 }
  0x75   : > { %p2062_p9 = pneg %p2061_p3  ;;  %p2068_p10 = por %p2067_p7, %p2066_p0 }
  0x77   : > { %p2069_p13 = pnand %p2068_p10, %p2062_p9 }
  0x79   : > { %2072 = shalt.err (!%p2069_p13)
}
  0x7a   : > { %1807 = dma.hbm_to_vmem [thread:$0]  (!%p2357_p2), %s499_s23, 64, %s502_s11, %s2367_s4  }
  0x7b   : > { %p2680_p5 = scmp.ne.s32.totalorder %s2662_s18, 0 }
  0x7c   : > { %s2425_s20 = sand.u32 (!%p2680_p5), 1, %s2149_s26   ;;  %p2681_p11 = scmp.ne.s32.totalorder (!%p2680_p5), %s2659_s16, 0 }
  0x7d   : > { %516 = sbr.rel (%p2680_p5) target bundleno = 1380 (0x564), region = 72  ;;  %s2428_s19 = sshll.u32 (!%p2680_p5), %s2425_s20, 2 }
  0x7e   : > { %s519_s22 = scalar_lea.sflag (!%p2680_p5), [#allocation6], %s2425_s20  ;;  %s522_s12 = scalar_lea.vmem (!%p2680_p5), [#allocation5], %s2428_s19 }
  0x82   : > { %2124 = dma.done.wait (%p2681_p11), %s519_s22, 64  }
  0x83   : > { %2126 = vsyncadd (%p2681_p11), %s519_s22, 4294967232  ;;  %s527_s4 = sand.u32 1, %s2285_s14   ;;  %s531_s24 = scalar_lea.vmem [#allocation8], %s2428_s19 }
  0x84   : > { %s528_s18 = scalar_lea.sflag [#allocation9], %s527_s4 }
  0x85   : > { %2128 = dma.done.wait (%p2681_p11), %s528_s18, 128  }
  0x86   : > { %2130 = vsyncadd (%p2681_p11), %s528_s18, 4294967168  ;;  %s540_s21 = scalar_lea.vmem [#allocation10], %s2428_s19  ;;  %p2682_p2 = scmp.eq.s32.totalorder %s2285_s14, 0 }
  0x88   : > { %2132 = dma.done.wait (%p2682_p2), [#allocation12], 512   ;;  %p2683_p1 = pmov %p2682_p2 }
  0x8a   : > { %2134 = vsyncadd (%p2683_p1), [#allocation12], 4294966784  ;;  %p2684_p6 = pmov %p2683_p1 }
  0x8b   : > { %p2685_p4 = pmov %p2683_p1 }
  0x8c   : > { %2136 = dma.done.wait (%p2684_p6), [#allocation15], 256  }
  0x8d   : > { %2138 = vsyncadd (%p2685_p4), [#allocation15], 4294967040  ;;  %v2175_v0 = vmov 0.0   ;;  %vm2176_vm0 = vmmov 0   ;;  %v1881_v1 = vld [vmem:[#allocation13 + $0x8] sm:$0xff]   ;;  %v1882_v2 = vld [vmem:[#allocation13] sm:$0xff]   ;;  %v841_v49 = vlaneseq }
  0x8e   : > { %1688 = vmatprep.subr.bf16.mxu0 %v2175_v0  ;;  %1692 = vmatprep.mubr.msk.bf16.mxu0 %vm2176_vm0, %v2175_v0  ;;  %v624_v3 = vld [vmem:[%s531_s24] sm:$0xf]  ;;  %vm648_vm1 = vcmask 261120   ;;  %v1883_v4 = vld [vmem:[#allocation11 + $0x8] sm:$0xff]   ;;  %v1884_v5 = vld [vmem:[#allocation11] sm:$0xff]   ;;  %vm760_vm2 = vcmask 257024  }
  0x8f   : > { %1696 = vmatprep.subr.bf16.mxu1 %v2175_v0  ;;  %1700 = vmatprep.mubr.msk.bf16.mxu1 %vm2176_vm0, %v2175_v0  ;;  %v764_v6 = vld [vmem:[%s522_s12] sm:$0xf]  ;;  %v1886_v8 = vld [vmem:[#allocation14] sm:$0xff]   ;;  %v692_v9 = vld [vmem:[%s540_s21] sm:$0xf]  ;;  %vm848_vm3 = vcmask 64512  }
  0x90   : > { %1689 = vmatpush3.bf16.msra.mxu0 %v1881_v1  ;;  %v1885_v7 = vld [vmem:[#allocation14 + $0x8] sm:$0xff]   ;;  %v1620_v10 = vld [vmem:[%s2623_s9] ss:$0 sm:$0xff]  ;;  %s2177_s25 = smov 112   ;;  %s2178_s30 = smov 120   ;;  %vm908_vm4 = vcmask 1043456  }
  0x91   : > { %1690 = vmatprep.subr.bf16.mxu0 %v2175_v0  ;;  %1697 = vmatpush3.bf16.msra.mxu1 %v1885_v7  ;;  %v1628_v17 = vld [vmem:[%s2622_s8] ss:$0 sm:$0xff]  ;;  %s2179_s23 = smov 104   ;;  %p612_p8 = scmp.lt.s32.totalorder %s2157_s28, 1  ;;  %v842_v53 = vshrl.u32 %v841_v49, 7  ;;  %vm955_vm5 = vcmask 60416  }
  0x92   : > { %1698 = vmatprep.subr.bf16.mxu1 %v2175_v0  ;;  %v1624_v29 = vld [vmem:[%s2624_s10] ss:$0 sm:$0xff]  ;;  %s2686_s12 = sld [smem:[#allocation30_spill]]  ;;  %s2180_s4 = smov 8   ;;  %vm1083_vm6 = vcmask 126016   ;;  %vm1210_vm7 = vcmask 191616  }
  0x93   : > { %s613_s15 = scalar_select %p612_p8, %s2157_s28, 1  ;;  %v843_v56 = vsub.s32 0, %v842_v53  ;;  %vm1337_vm8 = vcmask 257216  }
  0x94   : > { %1691 = vmatpush3.bf16.msra.mxu0 %v1882_v2  ;;  %s2687_s21 = sld [smem:[#allocation33_spill]]  ;;  %s2181_s29 = smov 16  }
  0x95   : > { %1704 = vmatprep.subr.bf16.mxu0 %v2175_v0  ;;  %1699 = vmatpush3.bf16.msra.mxu1 %v1886_v8  ;;  %s614_s13 = scalar_lea.vmem %s2617_s3, %s613_s15  ;;  %s2182_s17 = smov 24  }
  0x96   : > { %1712 = vmatprep.subr.bf16.mxu1 %v2175_v0  ;;  %v833_v47 = vld [vmem:[%s614_s13] sm:$0x1]  ;;  %s2689_s11 = sld [smem:[#allocation34_spill]]  ;;  %s1654_s15 = sshll.u32 %s2157_s28, 7 }
  0x97   : > { %1693 = vmatmul.mubr.msk.bf16.vlgmr.msra.gmra.mxu0 %vm648_vm1, %v624_v3  ;;  %v834_v48 = vunpack.c.0.s8 %v833_v47  ;;  %s2690_s22 = sld [smem:[#allocation35_spill]]  ;;  %s2183_s18 = smov [#allocation16]  }
  0x98   : > { %1705 = vmatpush3.bf16.msra.mxu0 %v1883_v4  ;;  %1708 = vmatprep.mubr.msk.bf16.mxu0 %vm2176_vm0, %v2175_v0  ;;  %v837_v50 = vld [vmem:[%s2686_s12] sm:$0x3]  ;;  %s2077_s24 = sshll.u32 %s2183_s18, 4  ;;  %s2078_s24 = int_to_ptr.vmem [resolvable:$false] %s2077_s24 }
  0x99   : > { %1706 = vmatprep.subr.bf16.mxu0 %v2175_v0  ;;  %1701 = vmatmul.mubr.msk.bf16.vlgmr.msra.gmra.mxu1 %vm648_vm1, %v692_v9  ;;  %v835_v51 = vcvt.s32.f32 %v834_v48  ;;  %v838_v52 = vunpack.c.0.s8 %v837_v50  ;;  %s2079_s14 = scalar_lea.vmem %s2078_s24, 256 }
  0x9a   : > { %1714 = vmatprep.mubr.msk.bf16.mxu1 %vm2176_vm0, %v2175_v0 }
  0x9b   : > { %v836_v54 = vmul.f32 -1e+09, %v835_v51  ;;  %v839_v55 = vcvt.s32.f32 %v838_v52 }
  0x9c   : > { %1707 = vmatpush3.bf16.msra.mxu0 %v1884_v5 }
  0x9d   : > { %1718 = vmatprep.subr.bf16.mxu0 %v2175_v0  ;;  %v840_v57 = vmul.f32 -1e+09, %v839_v55  ;;  %v844_v58 = vrot.slane %v836_v54, %v843_v56  ;;  %s2565_s12 = scalar_lea.hbm %s2690_s22, %s1654_s15 }
  0x9f   : > { %1709 = vmatmul.mubr.msk.bf16.vlgmr.msra.gmra.mxu0 %vm648_vm1, %v764_v6  ;;  %v845_v59 = vadd.f32 %v844_v58, %v840_v57 }
  0xa0   : > { %1720 = vmatprep.mubr.msk.bf16.mxu0 %vm2176_vm0, %v2175_v0 }
 0x157   : > { %v686_v11 = vpop.f32.mrf.mxu0 }
 0x158   : > { %v687_v12 = vadd.f32 %v1620_v10, %v686_v11 }
 0x159   : > { %v1694_v13 = vpop.f32.mrf.mxu0  ;;  %v753_v30 = vpop.f32.mrf.mxu1 }
 0x15a   : > { %v759_v14 = vpack.c.bf16 %v687_v12, %v687_v12  ;;  %v754_v31 = vadd.f32 %v1624_v29, %v753_v30 }
 0x15b   : > { %v689_v15 = vpop.f32.mrf.mxu0  ;;  %v1702_v32 = vpop.f32.mrf.mxu1 }
 0x15c   : > { %761 = vst.msk [vmem:[#allocation2] sm:$0xf] %vm760_vm2, %v759_v14  ;;  %v762_v33 = vpack.c.bf16 %v754_v31, %v754_v31 }
 0x15d   : > { %v1695_v16 = vpop.f32.mrf.mxu0  ;;  %v756_v34 = vpop.f32.mrf.mxu1 }
 0x15e   : > { %763 = vst.msk [vmem:[#allocation3] sm:$0xf] %vm760_vm2, %v762_v33 }
 0x15f   : > { %v826_v18 = vpop.f32.mrf.mxu0  ;;  %v1703_v35 = vpop.f32.mrf.mxu1 }
 0x160   : > { %v827_v19 = vadd.f32 %v1628_v17, %v826_v18 }
 0x161   : > { %v1710_v20 = vpop.f32.mrf.mxu0 }
 0x162   : > { %v832_v26 = vpack.c.bf16 %v827_v19, %v827_v19 }
 0x163   : > { %v846_v21 = vld [vmem:[#allocation2] sm:$0xf]  ;;  %v829_v23 = vpop.f32.mrf.mxu0 }
 0x164   : > { %v1887_v22 = vld [vmem:[#allocation2] ss:$0 sps:$4 sm:$0xff]   ;;  %v853_v24 = vsel %vm848_vm3, %v846_v21, 0 }
 0x165   : > { %v1888_v25 = vld [vmem:[#allocation2] ss:$0 sps:$4 sm:$0xff]   ;;  %1713 = vmatpush3.bf16.xpose.msra.mxu1 %v853_v24  ;;  %1092 = vrot.lane.b32.xlu1 %v1887_v22, %s2177_s25  ;;  %v1711_v27 = vpop.f32.mrf.mxu0  ;;  %v847_v36 = vld [vmem:[#allocation3] sm:$0xf] }
 0x166   : > { %965 = vrot.lane.b32.xlu0 %v1888_v25, %s2178_s30  ;;  %1724 = vmatprep.subr.bf16.mxu1 %v2175_v0  ;;  %v1889_v28 = vld [vmem:[#allocation2] ss:$0 sps:$4 sm:$0xff]   ;;  %v910_v37 = vsel %vm908_vm4, %v847_v36, 0  ;;  %v1890_v19 = vld [vmem:[#allocation3] ss:$0 sps:$4 sm:$0xff]  }
 0x167   : > { %1719 = vmatpush3.bf16.msra.mxu0 %v910_v37  ;;  %v1891_v22 = vld [vmem:[#allocation3] ss:$0 sps:$4 sm:$0xff]  }
 0x168   : > { %1730 = vmatprep.subr.bf16.mxu0 %v2175_v0 }
 0x169   : > { %1087 = vrot.lane.b32.xlu1 %v832_v26, %s2177_s25 }
 0x16a   : > { %960 = vrot.lane.b32.xlu0 %v832_v26, %s2178_s30 }
 0x16c   : > { %1715 = vmatmul.mubr.msk.bf16.vlgmr.msra.gmra.mxu1 %vm848_vm3, %v832_v26 }
 0x16d   : > { %1214 = vrot.lane.b32.xlu1 %v832_v26, %s2179_s23  ;;  %1726 = vmatprep.mubr.msk.bf16.mxu1 %vm2176_vm0, %v2175_v0  ;;  %v1892_v26 = vld [vmem:[#allocation3] ss:$0 sps:$4 sm:$0xff]  }
 0x16e   : > { %1219 = vrot.lane.b32.xlu0 %v1889_v28, %s2179_s23 }
 0x1d7   : > { %v1093_v40 = vpop.permute.xlu1 %1092 }
 0x1d8   : > { %v966_v38 = vpop.permute.xlu0 %965  ;;  %v1098_v42 = vsel %vm848_vm3, %v1093_v40, 0 }
 0x1d9   : > { %v971_v39 = vsel %vm848_vm3, %v966_v38, 0 }
 0x1da   : > { %1725 = vmatpush3.bf16.xpose.msra.mxu1 %v971_v39 }
 0x1db   : > { %1736 = vmatprep.subr.bf16.mxu1 %v2175_v0  ;;  %v1088_v44 = vpop.permute.xlu1 %1087 }
 0x1dc   : > { %v961_v41 = vpop.permute.xlu0 %960 }
 0x1df   : > { %v1215_v46 = vpop.permute.xlu1 %1214 }
 0x1e0   : > { %v1220_v43 = vpop.permute.xlu0 %1219 }
 0x1e1   : > { %1727 = vmatmul.mubr.msk.bf16.vlgmr.msra.gmra.mxu1 %vm848_vm3, %v961_v41  ;;  %v1225_v45 = vsel %vm848_vm3, %v1220_v43, 0 }
 0x1e2   : > { %1737 = vmatpush3.bf16.xpose.msra.mxu1 %v1098_v42  ;;  %1738 = vmatprep.mubr.msk.bf16.mxu1 %vm2176_vm0, %v2175_v0 }
 0x1e3   : > { %1748 = vmatprep.subr.bf16.mxu1 %v2175_v0 }
 0x1e9   : > { %1739 = vmatmul.mubr.msk.bf16.vlgmr.msra.gmra.mxu1 %vm848_vm3, %v1088_v44 }
 0x1ea   : > { %1749 = vmatpush3.bf16.xpose.msra.mxu1 %v1225_v45  ;;  %1750 = vmatprep.mubr.msk.bf16.mxu1 %vm2176_vm0, %v2175_v0 }
 0x1eb   : > { %1760 = vmatprep.subr.bf16.mxu1 %v2175_v0 }
 0x1f1   : > { %1751 = vmatmul.mubr.msk.bf16.vlgmr.msra.gmra.mxu1 %vm848_vm3, %v1215_v46 }
 0x1f2   : > { %1764 = vmatprep.mubr.msk.bf16.mxu1 %vm2176_vm0, %v2175_v0 }
 0x22c   : > { %v889_v60 = vpop.f32.mrf.mxu1 }
 0x22d   : > { %v890_v61 = vadd.f32 %v889_v60, %v845_v59 }
 0x22e   : > { %v1716_v62 = vpop.f32.mrf.mxu1 }
 0x22f   : > { %v895_v63 = vsel %vm848_vm3, %v890_v61, -inf }
 0x230   : > { %896 = vmax.xlane.f32.xlu0 %v895_v63  ;;  %v892_v1 = vpop.f32.mrf.mxu1 }
 0x232   : > { %v1717_v2 = vpop.f32.mrf.mxu1 }
 0x2a1   : > { %v1007_v3 = vpop.f32.mrf.mxu1 }
 0x2a2   : > { %v1008_v4 = vadd.f32 %v1007_v3, %v845_v59 }
 0x2a3   : > { %v1728_v5 = vpop.f32.mrf.mxu1 }
 0x2a4   : > { %v1013_v6 = vsel %vm848_vm3, %v1008_v4, -inf }
 0x2a5   : > { %1014 = vmax.xlane.f32.xlu1 %v1013_v6  ;;  %v1010_v7 = vpop.f32.mrf.mxu1 }
 0x2a7   : > { %v1729_v8 = vpop.f32.mrf.mxu1 }
 0x2a9   : > { %v1134_v9 = vpop.f32.mrf.mxu1 }
 0x2aa   : > { %v1135_v10 = vadd.f32 %v1134_v9, %v845_v59 }
 0x2ab   : > { %v1740_v11 = vpop.f32.mrf.mxu1 }
 0x2ac   : > { %v1140_v12 = vsel %vm848_vm3, %v1135_v10, -inf  ;;  %v1893_v11 = vld [vmem:[%s2687_s21 + $0x8] sm:$0xff]  }
 0x2ad   : > { %1141 = vmax.xlane.f32.xlu0 %v1140_v12  ;;  %v1137_v13 = vpop.f32.mrf.mxu1  ;;  %1761 = vmatpush3.bf16.msra.mxu1 %v1893_v11 }
 0x2ae   : > { %1762 = vmatprep.subr.bf16.mxu1 %v2175_v0 }
 0x2af   : > { %v1741_v14 = vpop.f32.mrf.mxu1 }
 0x2b0   : > { %v1894_v14 = vld [vmem:[%s2687_s21] sm:$0xff]  }
 0x2b1   : > { %v1261_v15 = vpop.f32.mrf.mxu1  ;;  %1763 = vmatpush3.bf16.msra.mxu1 %v1894_v14 }
 0x2b2   : > { %v1262_v16 = vadd.f32 %v1261_v15, %v845_v59 }
 0x2b3   : > { %v1752_v17 = vpop.f32.mrf.mxu1 }
 0x2b4   : > { %v1267_v18 = vsel %vm848_vm3, %v1262_v16, -inf }
 0x2b5   : > { %1268 = vmax.xlane.f32.xlu0 %v1267_v18  ;;  %v1264_v20 = vpop.f32.mrf.mxu1 }
 0x2b6   : > { %1026 = vrot.lane.b32.xlu1 %v1890_v19, %s2178_s30  ;;  %s1619_s30 = sshll.u32 %s2425_s20, 3 }
 0x2b7   : > { %v1753_v21 = vpop.f32.mrf.mxu1  ;;  %s611_s1 = scalar_lea.vmem [#allocation16], %s1619_s30 }
 0x2b8   : > { %s1422_s6 = sshll.u32 %s611_s1, 4  ;;  %s2567_s6 = int_to_ptr.vmem [resolvable:$true] %s1422_s6 }
 0x2b9   : > { %v897_v23 = vpop.xlane.xlu0 %896  ;;  %s2073_s28 = scalar_lea.vmem %s2567_s6, 128  ;;  %p2080_p7 = scmp.lt.s32.totalorder %s2567_s6, %s2078_s24 }
 0x2ba   : > { %v898_v24 = vsub.f32 %v890_v61, %v897_v23  ;;  %1280 = vrot.lane.b32.xlu1 %v1891_v22, %s2179_s23  ;;  %p2074_p12 = scmp.ne.s32.totalorder %s2567_s6, %s2073_s28  ;;  %p2081_p10 = scmp.lt.s32.totalorder %s2079_s14, %s2073_s28 }
 0x2bc   : > { %v899_v25 = vmul.f32 1.442695, %v898_v24  ;;  %p2082_p13 = por %p2081_p10, %p2080_p7 }
 0x2be   : > { %1895 = vpow2.f32 %v899_v25 }
 0x2cb   : > { %v1896_v27 = vpop.eup %1895  ;;  %1153 = vrot.lane.b32.xlu0 %v1892_v26, %s2177_s25  ;;  %s2688_s25 = sld [smem:[#allocation27_spill]] }
 0x2cc   : > { %v904_v28 = vpack.c.bf16 %v1896_v27, %v1896_v27  ;;  %v901_v45 = vsel %vm848_vm3, %v1896_v27, 0.0 }
 0x2ce   : > { %1721 = vmatmul.mubr.msk.bf16.vlgmr.msra.gmra.mxu0 %vm848_vm3, %v904_v28  ;;  %v1649_v28 = vld [vmem:[%s2689_s11] ss:$0 sm:$0xff] }
 0x2cf   : > { %1732 = vmatprep.mubr.msk.bf16.mxu0 %vm2176_vm0, %v2175_v0 }
 0x2d1   : > { %p2691_p3 = scmp.ne.s32.totalorder %s2688_s25, 0 }
 0x2d3   : > { %p2075_p9 = pnand %p2074_p12, %p2691_p3 }
 0x2d5   : > { %p2076_p0 = pneg %p2075_p9 }
 0x2d7   : > { %p2083_p5 = pnand %p2082_p13, %p2076_p0 }
 0x32e   : > { %v1015_v29 = vpop.xlane.xlu1 %1014 }
 0x32f   : > { %v1016_v30 = vsub.f32 %v1008_v4, %v1015_v29 }
 0x331   : > { %v1017_v31 = vmul.f32 1.442695, %v1016_v30 }
 0x332   : > { %v1027_v32 = vpop.permute.xlu1 %1026 }
 0x333   : > { %1897 = vpow2.f32 %v1017_v31  ;;  %v1032_v33 = vsel %vm908_vm4, %v1027_v32, 0 }
 0x334   : > { %1731 = vmatpush3.bf16.msra.mxu0 %v1032_v33 }
 0x335   : > { %1742 = vmatprep.subr.bf16.mxu0 %v2175_v0 }
 0x336   : > { %v1142_v34 = vpop.xlane.xlu0 %1141  ;;  %v1281_v47 = vpop.permute.xlu1 %1280 }
 0x337   : > { %v1143_v35 = vsub.f32 %v1135_v10, %v1142_v34  ;;  %v1286_v50 = vsel %vm908_vm4, %v1281_v47, 0 }
 0x339   : > { %v1144_v36 = vmul.f32 1.442695, %v1143_v35 }
 0x33b   : > { %1899 = vpow2.f32 %v1144_v36 }
 0x33e   : > { %v1269_v37 = vpop.xlane.xlu0 %1268 }
 0x33f   : > { %v1270_v38 = vsub.f32 %v1262_v16, %v1269_v37 }
 0x340   : > { %v1898_v39 = vpop.eup %1897 }
 0x341   : > { %v1271_v40 = vmul.f32 1.442695, %v1270_v38  ;;  %v1019_v41 = vsel %vm848_vm3, %v1898_v39, 0.0  ;;  %v1022_v42 = vpack.c.bf16 %v1898_v39, %v1898_v39 }
 0x342   : > { %1020 = vadd.xlane.f32.xlu1 %v1019_v41  ;;  %v1154_v43 = vpop.permute.xlu0 %1153 }
 0x343   : > { %1901 = vpow2.f32 %v1271_v40  ;;  %v1159_v44 = vsel %vm908_vm4, %v1154_v43, 0  ;;  %1733 = vmatmul.mubr.msk.bf16.vlgmr.msra.gmra.mxu0 %vm848_vm3, %v1022_v42 }
 0x344   : > { %1743 = vmatpush3.bf16.msra.mxu0 %v1159_v44  ;;  %1744 = vmatprep.mubr.msk.bf16.mxu0 %vm2176_vm0, %v2175_v0 }
 0x345   : > { %1754 = vmatprep.subr.bf16.mxu0 %v2175_v0 }
 0x346   : > { %902 = vadd.xlane.f32.xlu1 %v901_v45 }
 0x348   : > { %v1900_v46 = vpop.eup %1899 }
 0x349   : > { %v1146_v48 = vsel %vm848_vm3, %v1900_v46, 0.0  ;;  %v1149_v49 = vpack.c.bf16 %v1900_v46, %v1900_v46 }
 0x34a   : > { %1147 = vadd.xlane.f32.xlu0 %v1146_v48 }
 0x34b   : > { %1745 = vmatmul.mubr.msk.bf16.vlgmr.msra.gmra.mxu0 %vm848_vm3, %v1149_v49 }
 0x34c   : > { %1755 = vmatpush3.bf16.msra.mxu0 %v1286_v50  ;;  %1756 = vmatprep.mubr.msk.bf16.mxu0 %vm2176_vm0, %v2175_v0 }
 0x350   : > { %v1902_v51 = vpop.eup %1901 }
 0x351   : > { %v1273_v52 = vsel %vm848_vm3, %v1902_v51, 0.0  ;;  %v1276_v53 = vpack.c.bf16 %v1902_v51, %v1902_v51 }
 0x352   : > { %1274 = vadd.xlane.f32.xlu0 %v1273_v52 }
 0x353   : > { %1757 = vmatmul.mubr.msk.bf16.vlgmr.msra.gmra.mxu0 %vm848_vm3, %v1276_v53 }
 0x38e   : > { %v946_v54 = vpop.f32.mrf.mxu0 }
 0x390   : > { %v1722_v55 = vpop.f32.mrf.mxu0 }
 0x392   : > { %v949_v56 = vpop.f32.mrf.mxu0 }
 0x394   : > { %v1723_v57 = vpop.f32.mrf.mxu0 }
 0x3cb   : > { %v1021_v58 = vpop.xlane.xlu1 %1020 }
 0x3cf   : > { %v903_v59 = vpop.xlane.xlu1 %902 }
 0x3d0   : > { %1903 = vrcp.f32 %v903_v59 }
 0x3d1   : > { %1905 = vrcp.f32 %v1021_v58 }
 0x3d3   : > { %v1148_v63 = vpop.xlane.xlu0 %1147 }
 0x3d4   : > { %1907 = vrcp.f32 %v1148_v63 }
 0x3db   : > { %v1275_v2 = vpop.xlane.xlu0 %1274 }
 0x3dc   : > { %1909 = vrcp.f32 %v1275_v2 }
 0x3dd   : > { %v1904_v60 = vpop.eup %1903 }
 0x3de   : > { %v953_v61 = vmul.f32 %v1904_v60, %v946_v54  ;;  %v1906_v1 = vpop.eup %1905 }
 0x3e0   : > { %v954_v62 = vpack.c.bf16 %v953_v61, %v953_v61 }
 0x3e1   : > { %v1908_v9 = vpop.eup %1907 }
 0x3e2   : > { %956 = vst.msk [vmem:[#allocation4] sm:$0xf] %vm955_vm5, %v954_v62 }
 0x3e9   : > { %v1910_v18 = vpop.eup %1909 }
 0x403   : > { %v1068_v3 = vpop.f32.mrf.mxu0 }
 0x404   : > { %v1075_v4 = vmul.f32 %v1906_v1, %v1068_v3 }
 0x405   : > { %v1734_v5 = vpop.f32.mrf.mxu0 }
 0x406   : > { %v1657_v6 = vpack.c.bf16 %v1075_v4, %v1075_v4 }
 0x407   : > { %v1071_v7 = vpop.f32.mrf.mxu0 }
 0x408   : > { %1080 = vrot.lane.b32.xlu0 %v1657_v6, %s2180_s4  ;;  %s1408_s4 = scalar_lea.sflag [#allocation7], %s2425_s20 }
 0x409   : > { %v1735_v8 = vpop.f32.mrf.mxu0 }
 0x40b   : > { %v1195_v10 = vpop.f32.mrf.mxu0 }
 0x40c   : > { %v1202_v12 = vmul.f32 %v1908_v9, %v1195_v10 }
 0x40d   : > { %v1746_v13 = vpop.f32.mrf.mxu0 }
 0x40e   : > { %v1658_v15 = vpack.c.bf16 %v1202_v12, %v1202_v12 }
 0x40f   : > { %v1198_v16 = vpop.f32.mrf.mxu0 }
 0x410   : > { %1207 = vrot.lane.b32.xlu1 %v1658_v15, %s2181_s29 }
 0x411   : > { %v1747_v17 = vpop.f32.mrf.mxu0 }
 0x413   : > { %v1322_v19 = vpop.f32.mrf.mxu0 }
 0x414   : > { %v1329_v20 = vmul.f32 %v1910_v18, %v1322_v19 }
 0x415   : > { %v1758_v21 = vpop.f32.mrf.mxu0 }
 0x416   : > { %v1659_v22 = vpack.c.bf16 %v1329_v20, %v1329_v20 }
 0x417   : > { %v1325_v23 = vpop.f32.mrf.mxu0 }
 0x418   : > { %1334 = vrot.lane.b32.xlu1 %v1659_v22, %s2182_s17 }
 0x419   : > { %v1759_v24 = vpop.f32.mrf.mxu0 }
 0x47a   : > { %v1081_v25 = vpop.permute.xlu0 %1080 }
 0x47b   : > { %1084 = vst.msk [vmem:[#allocation4] sm:$0xf] %vm1083_vm6, %v1081_v25 }
 0x482   : > { %v1208_v0 = vpop.permute.xlu1 %1207 }
 0x483   : > { %1211 = vst.msk [vmem:[#allocation4] sm:$0xf] %vm1210_vm7, %v1208_v0 }
 0x48a   : > { %v1335_v26 = vpop.permute.xlu1 %1334 }
 0x48b   : > { %1338 = vst.msk [vmem:[#allocation4] sm:$0xf] %vm1337_vm8, %v1335_v26 }
 0x492   : > { %v1339_v27 = vld [vmem:[#allocation4] sm:$0xf] }
 0x493   : > { %1765 = vmatmul.mubr.msk.bf16.vlgmr.msra.gmra.mxu1 %vm648_vm1, %v1339_v27 }
 0x553   : > { %v1400_v29 = vpop.f32.mrf.mxu1 }
 0x554   : > { %v1401_v30 = vadd.f32 %v1649_v28, %v1400_v29 }
 0x555   : > { %v1766_v31 = vpop.f32.mrf.mxu1 }
 0x556   : > { %1406 = vst.msk [vmem:[%s611_s1] sm:$0xff] %vm648_vm1, %v1401_v30 }
 0x557   : > { %v1403_v32 = vpop.f32.mrf.mxu1 }
 0x558   : > { %2086 = shalt.err (!%p2083_p5)
}
 0x559   : > { %s2087_s16 = scalar_lea.hbm %s2565_s12, 128  ;;  %s2091_s17 = scalar_lea.hbm %s2690_s22, 256 }
 0x55a   : > { %p2088_p11 = scmp.ne.s32.totalorder %s2565_s12, %s2087_s16  ;;  %p2092_p6 = scmp.lt.s32.totalorder %s2565_s12, %s2690_s22 }
 0x55b   : > { %p2093_p4 = scmp.lt.s32.totalorder %s2091_s17, %s2087_s16 }
 0x55c   : > { %p2089_p2 = pnand %p2088_p11, %p2691_p3 }
 0x55d   : > { %p2094_p8 = por %p2093_p4, %p2092_p6 }
 0x55e   : > { %p2090_p1 = pneg %p2089_p2 }
 0x560   : > { %p2095_p12 = pnand %p2094_p8, %p2090_p1 }
 0x562   : > { %2098 = shalt.err (!%p2095_p12)
}
 0x563   : > { %1786 = dma.vmem_to_hbm [thread:$0]  (%p2691_p3), %s2567_s6, 128, %s2565_s12, %s1408_s4   ;;  %v1767_v33 = vpop.f32.mrf.mxu1 }
 0x564 PF: > { %s2692_s5 = sld [smem:[#allocation22_spill]] }
 0x565   : > { %s2693_s11 = sld [smem:[#allocation25_spill]] }
 0x566   : > { %s2694_s15 = sld [smem:[#allocation24_spill]] }
 0x56a   : > { %s1434_s1 = sand.u32 1, %s2692_s5  }
 0x56b   : > { %p2695_p9 = scmp.ne.s32.totalorder %s2693_s11, 0  ;;  %s1435_s13 = scalar_lea.sflag [#allocation7], %s1434_s1 }
 0x56c   : > { %p2696_p0 = scmp.ge.s32.totalorder %s2694_s15, 2 }
 0x56e   : > { %p1809_p7 = pnand %p2696_p0, %p2695_p9 }
 0x570   : > { %p1810_p10 = pneg %p1809_p7 }
 0x572   : > { %2140 = dma.done.wait (%p1810_p10), %s1435_s13, 128  }
 0x573   : > { %2142 = vsyncadd (%p1810_p10), %s1435_s13, 4294967168  ;;  %s34_s30 = sadd.s32 1, %s2694_s15   ;;  %s2697_s19 = sld [smem:[#allocation28_spill]] }
 0x574   : > { %p31_p13 = scmp.ge.s32.totalorder %s34_s30, 4   ;;  %s2698_s28 = sld [smem:[#allocation23_spill]] }
 0x575   : > { %s2699_s29 = sld [smem:[#allocation26_spill]]  ;;  %s2700_s25 = smov %s2149_s26 }
 0x576   : > { %s2701_s26 = smov %s2153_s27  ;;  %33 = sbr.rel (!%p31_p13) target bundleno = 18 (0x12), region = 163 }
 0x579   : > { %s2702_s27 = smov %s2697_s19 }
 0x57b   :  { %1440 = vsyncpa [#allocation6], 1 }
 0x57c   :  { %1442 = vsyncpa [#allocation6 + $0x1], 1 }
 0x57d   :  { %1443 = vsyncpa [#allocation9], 1 }
 0x57e   :  { %1445 = vsyncpa [#allocation9 + $0x1], 1 }
 0x57f   :  { %1446 = vsyncpa [#allocation12], 1 }
 0x580   :  { %1447 = vsyncpa [#allocation15], 1 }
 0x581   :  { %1448 = vsyncpa [#allocation7], 1 }
 0x582   :  { %1450 = vsyncpa [#allocation7 + $0x1], 1 }

</bundles_post_ra>
